<compile_context>
chip_gen: v6e
topology: v6e:2x2x1
jax: 0.10.0
libtpu: 0.0.40
codegen_flags: <defaults>
</compile_context>

<pallas_src>
import jax
import jax.numpy as jnp
from jax import lax
from jax.experimental import pallas as pl
from jax.experimental.pallas import tpu as pltpu


def _round_up(x, m):
    return ((x + m - 1) // m) * m


def _unpool_kernel(idx_ref, h_ref, out_ref, acc_ref):
    # idx_ref: (1, TN)  int32   -- -1 in padded positions (matches no output row)
    # h_ref:   (TN, Cp) h.dtype -- batch folded into lanes, lane-padded
    # out_ref: (TP, Cp) h.dtype -- tile j of the (padded) pre_node_num axis
    # acc_ref: (TP, Cp) f32     -- resident accumulator across the N (k) axis
    j = pl.program_id(0)  # output-node tile   (parallel)
    k = pl.program_id(1)  # input-node tile    (reduction; exact sum under unique idx)
    tile_p = out_ref.shape[0]

    @pl.when(k == 0)
    def _():
        acc_ref[...] = jnp.zeros_like(acc_ref)

    idx_row = idx_ref[...]                                   # (1, TN)
    tn = idx_row.shape[1]
    p_ids = lax.broadcasted_iota(jnp.int32, (tile_p, tn), 0) + j * tile_p
    # One-hot block in h's dtype: bf16 h -> native bf16 MXU; f32 h -> exact f32 copy.
    onehot = (p_ids == idx_row).astype(h_ref.dtype)          # (TP, TN)
    acc_ref[...] += jnp.dot(onehot, h_ref[...],
                            preferred_element_type=jnp.float32)

    @pl.when(k == pl.num_programs(1) - 1)
    def _():
        out_ref[...] = acc_ref[...].astype(out_ref.dtype)


def unpool(h, pre_node_num, idx, *, tile_p=None, tile_n=None):
    """Pallas equivalent of Unpool.forward(h, pre_node_num, idx).

    h:   [N, C] or [B, N, C]
    idx: [N] unique indices into the previous (larger) level.
    Note: duplicate idx entries would SUM contributions (PyTorch gives
    last-writer-wins); BSMS unpool indices are unique so this never triggers.
    """
    squeeze = h.ndim == 2
    if squeeze:
        h = h[None]
    b, n, c = h.shape
    p = int(pre_node_num)

    # Fold batch into the lane (channel) axis: (B, N, C) -> (N, B*C).
    bc = b * c
    h2 = jnp.transpose(h, (1, 0, 2)).reshape(n, bc)
    c_pad = _round_up(bc, 128)                     # lane-dense output stores

    # Output-node tile: multiple of 16 (safe for bf16 sublane packing), default 256.
    if tile_p is None:
        tile_p = min(256, _round_up(p, 16))
    tile_p = max(16, _round_up(int(tile_p), 16))
    p_pad = _round_up(p, tile_p)

    # Input-node tile: multiple of 128 (also satisfies idx's lane constraint).
    if tile_n is None:
        tile_n = min(512, _round_up(n, 128))
    tile_n = max(128, _round_up(int(tile_n), 128))
    n_pad = _round_up(n, tile_n)

    # Pad inputs. Padded idx entries are -1 (never match any output row);
    # padded h rows are zero.
    h2p = jnp.zeros((n_pad, c_pad), h.dtype).at[:n, :bc].set(h2)
    idx_p = jnp.full((1, n_pad), -1, dtype=jnp.int32).at[0, :n].set(
        idx.astype(jnp.int32).reshape(n)
    )

    grid = (p_pad // tile_p, n_pad // tile_n)
    itemsize = jnp.dtype(h.dtype).itemsize
    cost = pl.CostEstimate(
        flops=2 * p_pad * n_pad * c_pad,
        transcendentals=0,
        bytes_accessed=(n_pad * c_pad * itemsize          # h
                        + n_pad * 4                        # idx
                        + p_pad * c_pad * itemsize),       # out
    )

    out = pl.pallas_call(
        _unpool_kernel,
        out_shape=jax.ShapeDtypeStruct((p_pad, c_pad), h.dtype),
        grid_spec=pltpu.PrefetchScalarGridSpec(
            num_scalar_prefetch=0,
            grid=grid,
            in_specs=[
                pl.BlockSpec((1, tile_n), lambda j, k: (0, k)),       # idx tile
                pl.BlockSpec((tile_n, c_pad), lambda j, k: (k, 0)),   # h tile
            ],
            out_specs=pl.BlockSpec((tile_p, c_pad), lambda j, k: (j, 0)),
            scratch_shapes=[pltpu.VMEM((tile_p, c_pad), jnp.float32)],
        ),
        compiler_params=pltpu.CompilerParams(
            dimension_semantics=("parallel", "arbitrary"),
        ),
        cost_estimate=cost,
    )(idx_p, h2p)

    # Unpad + unfold: (Ppad, Cpad) -> (P, B*C) -> (B, P, C).
    out = out[:p, :bc].reshape(p, b, c).transpose(1, 0, 2)
    if squeeze:
        out = out[0]
    return out


if __name__ == "__main__":
    key = jax.random.PRNGKey(0)
    k_h, k_idx, k_h2, k_idx2 = jax.random.split(key, 4)

    # --- test 1: small batched [B, N, C] f32 + unbatched view ---
    B, N, C = 2, 24, 32
    PRE_NODE_NUM = 64
    h3 = jax.random.normal(k_h, (B, N, C), dtype=jnp.float32)
    idx = jax.random.permutation(k_idx, PRE_NODE_NUM)[:N].astype(jnp.int32)

    out3 = jax.block_until_ready(unpool(h3, PRE_NODE_NUM, idx))
    ref3 = jnp.zeros((B, PRE_NODE_NUM, C), h3.dtype).at[:, idx].set(h3)
    assert out3.shape == (B, PRE_NODE_NUM, C)
    assert jnp.allclose(out3, ref3, atol=1e-6), "batched f32 unpool mismatch"

    h2d = h3[0]
    out2 = jax.block_until_ready(unpool(h2d, PRE_NODE_NUM, idx))
    ref2 = jnp.zeros((PRE_NODE_NUM, C), h2d.dtype).at[idx].set(h2d)
    assert out2.shape == (PRE_NODE_NUM, C)
    assert jnp.allclose(out2, ref2, atol=1e-6), "unbatched f32 unpool mismatch"

    # --- test 2: bf16 path, multi-tile grid (exercises P tiles + N-axis accumulation) ---
    N2, C2, P2 = 300, 48, 1000
    hb = jax.random.normal(k_h2, (N2, C2), dtype=jnp.float32).astype(jnp.bfloat16)
    idx2 = jax.random.permutation(k_idx2, P2)[:N2].astype(jnp.int32)

    outb = jax.block_until_ready(unpool(hb, P2, idx2, tile_p=256, tile_n=128))
    refb = jnp.zeros((P2, C2), hb.dtype).at[idx2].set(hb)
    assert outb.shape == (P2, C2)
    assert jnp.allclose(outb.astype(jnp.float32), refb.astype(jnp.float32),
                        atol=1e-2), "bf16 multi-tile unpool mismatch"

    print("KERNEL_OK")
</pallas_src>

<mosaic_0001>
module attributes {stable_mosaic.version = 11 : i64} {
  func.func @_unpool_kernel(%arg0: i32, %arg1: i32, %arg2: memref<1x128xi32, #tpu.memory_space<vmem>>, %arg3: memref<128x128xf32, #tpu.memory_space<vmem>>, %arg4: memref<64x128xf32, #tpu.memory_space<vmem>>, %arg5: memref<64x128xf32, #tpu.memory_space<vmem>>) attributes {dimension_semantics = [#tpu.dimension_semantics<parallel>, #tpu.dimension_semantics<arbitrary>], iteration_bounds = array<i64: 1, 1>, scalar_prefetch = 0 : i64, scratch_operands = 1 : i64, tpu.core_type = #tpu.core_type<tc>, window_params = [{transform_indices = @transform_0, window_bounds = array<i64: 1, 128>}, {transform_indices = @transform_1, window_bounds = array<i64: 128, 128>}, {transform_indices = @transform_2, window_bounds = array<i64: 64, 128>}]} {
    %c0_i32 = arith.constant 0 : i32
    %0 = arith.cmpi eq, %arg1, %c0_i32 : i32
    %1 = arith.extui %0 : i1 to i32
    %c0_i32_0 = arith.constant 0 : i32
    %2 = arith.cmpi ne, %1, %c0_i32_0 : i32
    scf.if %2 {
      %cst_10 = arith.constant 0.000000e+00 : f32
      %20 = vector.broadcast %cst_10 : f32 to vector<64x128xf32>
      %c0_11 = arith.constant 0 : index
      %c0_12 = arith.constant 0 : index
      %21 = vector.load %arg5[%c0_11, %c0_12] : memref<64x128xf32, #tpu.memory_space<vmem>>, vector<64x128xf32>
      tpu.vector_store %arg5[%c0_11, %c0_12], %20 {strides = array<i32>} : memref<64x128xf32, #tpu.memory_space<vmem>>, vector<64x128xf32>,
    } else {
    }
    %c0 = arith.constant 0 : index
    %c0_1 = arith.constant 0 : index
    %3 = vector.load %arg2[%c0, %c0_1] : memref<1x128xi32, #tpu.memory_space<vmem>>, vector<1x128xi32>
    %4 = tpu.iota {dimensions = array<i32: 0>} : vector<64x128xi32>
    %c64_i32 = arith.constant 64 : i32
    %5 = arith.muli %arg0, %c64_i32 : i32
    %6 = vector.broadcast %5 : i32 to vector<64x128xi32>
    %7 = arith.addi %4, %6 : vector<64x128xi32>
    %8 = vector.broadcast %3 : vector<1x128xi32> to vector<64x128xi32>
    %9 = arith.cmpi eq, %7, %8 : vector<64x128xi32>
    %10 = arith.extui %9 : vector<64x128xi1> to vector<64x128xi32>
    %11 = arith.sitofp %10 : vector<64x128xi32> to vector<64x128xf32>
    %c0_2 = arith.constant 0 : index
    %c0_3 = arith.constant 0 : index
    %12 = vector.load %arg5[%c0_2, %c0_3] : memref<64x128xf32, #tpu.memory_space<vmem>>, vector<64x128xf32>
    %c0_4 = arith.constant 0 : index
    %c0_5 = arith.constant 0 : index
    %13 = vector.load %arg3[%c0_4, %c0_5] : memref<128x128xf32, #tpu.memory_space<vmem>>, vector<128x128xf32>
    %cst = arith.constant dense<0.000000e+00> : vector<64x128xf32>
    %14 = tpu.matmul %11, %13, %cst {dimension_numbers = #tpu.dot_dimension_numbers<[1], [0], [0], [1], [0, 0, 1, 1], [], []>} : vector<64x128xf32>, vector<128x128xf32>, vector<64x128xf32> -> vector<64x128xf32>
    %15 = arith.addf %12, %14 : vector<64x128xf32>
    %c0_6 = arith.constant 0 : index
    %c0_7 = arith.constant 0 : index
    %16 = vector.load %arg5[%c0_6, %c0_7] : memref<64x128xf32, #tpu.memory_space<vmem>>, vector<64x128xf32>
    tpu.vector_store %arg5[%c0_6, %c0_7], %15 {strides = array<i32>} : memref<64x128xf32, #tpu.memory_space<vmem>>, vector<64x128xf32>,
    %c0_i32_8 = arith.constant 0 : i32
    %17 = arith.cmpi eq, %arg1, %c0_i32_8 : i32
    %18 = arith.extui %17 : i1 to i32
    %c0_i32_9 = arith.constant 0 : i32
    %19 = arith.cmpi ne, %18, %c0_i32_9 : i32
    scf.if %19 {
      %c0_10 = arith.constant 0 : index
      %c0_11 = arith.constant 0 : index
      %20 = vector.load %arg5[%c0_10, %c0_11] : memref<64x128xf32, #tpu.memory_space<vmem>>, vector<64x128xf32>
      %c0_12 = arith.constant 0 : index
      %c0_13 = arith.constant 0 : index
      %21 = vector.load %arg4[%c0_12, %c0_13] : memref<64x128xf32, #tpu.memory_space<vmem>>, vector<64x128xf32>
      tpu.vector_store %arg4[%c0_12, %c0_13], %20 {strides = array<i32>} : memref<64x128xf32, #tpu.memory_space<vmem>>, vector<64x128xf32>,
    } else {
    }
    return
  }
  func.func @transform_0(%arg0: i32, %arg1: i32) -> (i32, i32) {
    %c0_i32 = arith.constant 0 : i32
    %c0_i32_0 = arith.constant 0 : i32
    return %c0_i32, %arg1 : i32, i32
  }
  func.func @transform_1(%arg0: i32, %arg1: i32) -> (i32, i32) {
    %c0_i32 = arith.constant 0 : i32
    %c0_i32_0 = arith.constant 0 : i32
    return %arg1, %c0_i32 : i32, i32
  }
  func.func @transform_2(%arg0: i32, %arg1: i32) -> (i32, i32) {
    %c0_i32 = arith.constant 0 : i32
    %c0_i32_0 = arith.constant 0 : i32
    return %arg0, %c0_i32 : i32, i32
  }
}

</mosaic_0001>

<bundles_post_ra>
// kernel: tpu_custom_call.1
= control target key start
LH: loop header
LB: loop body
LE: loop exit
PB: predicated region body
PF: predicated region fallthrough
CT: control target
= control target key end

     0   :  { %7 = vsyncpa [#allocation4], 0  ;;  %s505_s0 = inlined_call_operand.hbm [shape: s32[1,128], index: 0, kind: input, shape index: {}]   ;;  %s506_s1 = inlined_call_operand.hbm [shape: f32[128,128], index: 1, kind: input, shape index: {}]   ;;  %s507_s2 = inlined_call_operand.hbm [shape: f32[64,128], index: 2, kind: output, shape index: {}]  }
   0x1   :  { %8 = vsyncpa [#allocation7], 0 }
   0x2   :  { %9 = vsyncpa [#allocation5], 0  ;;  %s469_s9 = smov [#allocation3]   ;;  %s470_s11 = smov [#allocation6]  }
   0x3   :  { %s16_s10 = sshll.u32 %s469_s9, 4  ;;  %s25_s12 = sshll.u32 %s470_s11, 4  ;;  %s17_s10 = int_to_ptr.vmem [resolvable:$true] %s16_s10  ;;  %s26_s12 = int_to_ptr.vmem [resolvable:$true] %s25_s12 }
   0x4   :  { %s411_s13 = scalar_lea.vmem %s17_s10, 16  ;;  %s415_s14 = scalar_lea.vmem %s17_s10, 32 }
   0x5   :  { %p412_p0 = scmp.ne.s32.totalorder %s17_s10, %s411_s13  ;;  %p416_p1 = scmp.lt.s32.totalorder %s17_s10, %s17_s10 }
   0x6   :  { %p417_p2 = scmp.lt.s32.totalorder %s415_s14, %s411_s13 }
   0x8   :  { %p418_p3 = por %p417_p2, %p416_p1 }
   0xa   :  { %p419_p4 = pnand %p418_p3, %p412_p0 }
   0xc   :  { %422 = shalt.err (!%p419_p4)
}
   0xd   :  { %19 = dma.hbm_to_vmem [thread:$0]  %s505_s0, 16, %s17_s10, [#allocation4]  }
   0xe   :  { %s431_s17 = scalar_lea.vmem %s26_s12, 2048  ;;  %p436_p6 = scmp.lt.s32.totalorder %s26_s12, %s26_s12 }
   0xf   :  { %p432_p5 = scmp.ne.s32.totalorder %s26_s12, %s431_s17  ;;  %p437_p7 = scmp.lt.s32.totalorder %s431_s17, %s431_s17 }
  0x11   :  { %p438_p8 = por %p437_p7, %p436_p6 }
  0x13   :  { %p439_p9 = pnand %p438_p8, %p432_p5 }
  0x15   :  { %442 = shalt.err (!%p439_p9)
}
  0x16   :  { %s471_s18 = smov 128   ;;  %s472_s19 = smov 8  }
  0x17   :  { %31 = dma.hbm_to_vmem [thread:$0]  %s506_s1, 2048, %s26_s12, [#allocation7], %s471_s18, %s471_s18, %s472_s19  }
  0x18   :  { %463 = dma.done.wait [#allocation4], 16  }
  0x19   :  { %464 = vsyncadd [#allocation4], 4294967280 }
  0x1a   :  { %465 = dma.done.wait [#allocation7], 2048  }
  0x1b   :  { %466 = vsyncadd [#allocation7], 4294965248  ;;  %v121_v0 = vld [vmem:[#allocation6 + $0x78] sm:$0xff]  ;;  %v120_v1 = vld [vmem:[#allocation6 + $0x70] sm:$0xff]  ;;  %v51_v11 = vlaneseq  ;;  %v473_v26 = vmov 1.0   ;;  %s474_s0 = smov [#allocation8]  }
  0x1c   :  { %321 = vmatprep.subr.mxu0 %v121_v0  ;;  %365 = vmatprep.subr.mxu1 %v121_v0  ;;  %v119_v2 = vld [vmem:[#allocation6 + $0x68] sm:$0xff]  ;;  %v118_v3 = vld [vmem:[#allocation6 + $0x60] sm:$0xff]  ;;  %v117_v4 = vld [vmem:[#allocation6 + $0x58] sm:$0xff]  ;;  %s267_s1 = sshll.u32 %s474_s0, 4  ;;  %s268_s1 = int_to_ptr.vmem [resolvable:$true] %s267_s1 }
  0x1d   :  { %322 = vmatpush3.msra.mxu0 %v121_v0  ;;  %381 = vmatpush3.msra.mxu1 %v121_v0  ;;  %v116_v5 = vld [vmem:[#allocation6 + $0x50] sm:$0xff]  ;;  %v115_v6 = vld [vmem:[#allocation6 + $0x48] sm:$0xff]  ;;  %v114_v7 = vld [vmem:[#allocation6 + $0x40] sm:$0xff]  ;;  %v52_v14 = vshrl.u32 %v51_v11, 7  ;;  %s443_s22 = scalar_lea.vmem %s268_s1, 1024  ;;  %p448_p11 = scmp.lt.s32.totalorder %s268_s1, %s268_s1 }
  0x1e   :  { %323 = vmatprep.subr.mxu0 %v120_v1  ;;  %366 = vmatprep.subr.mxu1 %v120_v1  ;;  %v113_v8 = vld [vmem:[#allocation6 + $0x38] sm:$0xff]  ;;  %v112_v9 = vld [vmem:[#allocation6 + $0x30] sm:$0xff]  ;;  %v111_v10 = vld [vmem:[#allocation6 + $0x28] sm:$0xff]  ;;  %p444_p10 = scmp.ne.s32.totalorder %s268_s1, %s443_s22  ;;  %p449_p12 = scmp.lt.s32.totalorder %s443_s22, %s443_s22 }
  0x1f   :  { %324 = vmatpush3.msra.mxu0 %v120_v1  ;;  %382 = vmatpush3.msra.mxu1 %v120_v1  ;;  %v110_v12 = vld [vmem:[#allocation6 + $0x20] sm:$0xff]  ;;  %v109_v13 = vld [vmem:[#allocation6 + $0x18] sm:$0xff]  ;;  %v108_v15 = vld [vmem:[#allocation6 + $0x10] sm:$0xff]  ;;  %v56_v17 = vadd.s32 32, %v52_v14  ;;  %v53_v19 = vadd.s32 8, %v52_v14  ;;  %v57_v20 = vadd.s32 40, %v52_v14 }
  0x20   :  { %325 = vmatprep.subr.mxu0 %v119_v2  ;;  %367 = vmatprep.subr.mxu1 %v119_v2  ;;  %v107_v16 = vld [vmem:[#allocation6 + $0x8] sm:$0xff]  ;;  %v280_v18 = vld [vmem:[#allocation3] ss:$0 sm:$0xff]  ;;  %v106_v21 = vld [vmem:[#allocation6] sm:$0xff]  ;;  %v54_v22 = vadd.s32 16, %v52_v14  ;;  %v58_v23 = vadd.s32 48, %v52_v14  ;;  %p450_p13 = por %p449_p12, %p448_p11 }
  0x21   :  { %326 = vmatpush3.msra.mxu0 %v119_v2  ;;  %383 = vmatpush3.msra.mxu1 %v119_v2  ;;  %vm74_vm0 = vcmp.eq.s32.totalorder %v52_v14, %v280_v18  ;;  %vm78_vm1 = vcmp.eq.s32.totalorder %v56_v17, %v280_v18  ;;  %vm75_vm2 = vcmp.eq.s32.totalorder %v53_v19, %v280_v18  ;;  %v55_v24 = vadd.s32 24, %v52_v14 }
  0x22   :  { %327 = vmatprep.subr.mxu0 %v118_v3  ;;  %368 = vmatprep.subr.mxu1 %v118_v3  ;;  %vm79_vm3 = vcmp.eq.s32.totalorder %v57_v20, %v280_v18  ;;  %v59_v25 = vadd.s32 56, %v52_v14  ;;  %vm76_vm4 = vcmp.eq.s32.totalorder %v54_v22, %v280_v18  ;;  %vm80_vm5 = vcmp.eq.s32.totalorder %v58_v23, %v280_v18  ;;  %p451_p0 = pnand %p450_p13, %p444_p10 }
  0x23   :  { %328 = vmatpush3.msra.mxu0 %v118_v3  ;;  %384 = vmatpush3.msra.mxu1 %v118_v3  ;;  %vm77_vm6 = vcmp.eq.s32.totalorder %v55_v24, %v280_v18 }
  0x24   :  { %329 = vmatprep.subr.mxu0 %v117_v4  ;;  %369 = vmatprep.subr.mxu1 %v117_v4  ;;  %vm81_vm7 = vcmp.eq.s32.totalorder %v59_v25, %v280_v18 }
  0x25   :  { %330 = vmatpush3.msra.mxu0 %v117_v4  ;;  %385 = vmatpush3.msra.mxu1 %v117_v4 }
  0x26   :  { %331 = vmatprep.subr.mxu0 %v116_v5  ;;  %370 = vmatprep.subr.mxu1 %v116_v5 }
  0x27   :  { %332 = vmatpush3.msra.mxu0 %v116_v5  ;;  %386 = vmatpush3.msra.mxu1 %v116_v5 }
  0x28   :  { %333 = vmatprep.subr.mxu0 %v115_v6  ;;  %371 = vmatprep.subr.mxu1 %v115_v6 }
  0x29   :  { %334 = vmatpush3.msra.mxu0 %v115_v6  ;;  %387 = vmatpush3.msra.mxu1 %v115_v6 }
  0x2a   :  { %335 = vmatprep.subr.mxu0 %v114_v7  ;;  %372 = vmatprep.subr.mxu1 %v114_v7 }
  0x2b   :  { %336 = vmatpush3.msra.mxu0 %v114_v7  ;;  %388 = vmatpush3.msra.mxu1 %v114_v7 }
  0x2c   :  { %337 = vmatprep.subr.mxu0 %v113_v8  ;;  %373 = vmatprep.subr.mxu1 %v113_v8 }
  0x2d   :  { %338 = vmatpush3.msra.mxu0 %v113_v8  ;;  %389 = vmatpush3.msra.mxu1 %v113_v8 }
  0x2e   :  { %339 = vmatprep.subr.mxu0 %v112_v9  ;;  %374 = vmatprep.subr.mxu1 %v112_v9 }
  0x2f   :  { %340 = vmatpush3.msra.mxu0 %v112_v9  ;;  %390 = vmatpush3.msra.mxu1 %v112_v9 }
  0x30   :  { %341 = vmatprep.subr.mxu0 %v111_v10  ;;  %375 = vmatprep.subr.mxu1 %v111_v10 }
  0x31   :  { %342 = vmatpush3.msra.mxu0 %v111_v10  ;;  %391 = vmatpush3.msra.mxu1 %v111_v10 }
  0x32   :  { %343 = vmatprep.subr.mxu0 %v110_v12  ;;  %376 = vmatprep.subr.mxu1 %v110_v12 }
  0x33   :  { %344 = vmatpush3.msra.mxu0 %v110_v12  ;;  %392 = vmatpush3.msra.mxu1 %v110_v12 }
  0x34   :  { %345 = vmatprep.subr.mxu0 %v109_v13  ;;  %377 = vmatprep.subr.mxu1 %v109_v13 }
  0x35   :  { %346 = vmatpush3.msra.mxu0 %v109_v13  ;;  %393 = vmatpush3.msra.mxu1 %v109_v13 }
  0x36   :  { %347 = vmatprep.subr.mxu0 %v108_v15  ;;  %378 = vmatprep.subr.mxu1 %v108_v15 }
  0x37   :  { %348 = vmatpush3.msra.mxu0 %v108_v15  ;;  %394 = vmatpush3.msra.mxu1 %v108_v15 }
  0x38   :  { %349 = vmatprep.subr.mxu0 %v107_v16  ;;  %379 = vmatprep.subr.mxu1 %v107_v16 }
  0x39   :  { %350 = vmatpush3.msra.mxu0 %v107_v16  ;;  %395 = vmatpush3.msra.mxu1 %v107_v16 }
  0x3a   :  { %351 = vmatprep.subr.mxu0 %v106_v21  ;;  %380 = vmatprep.subr.mxu1 %v106_v21 }
  0x3b   :  { %352 = vmatpush3.msra.mxu0 %v106_v21  ;;  %396 = vmatpush3.msra.mxu1 %v106_v21 }
  0x3c   :  { %353 = vmatprep.mubr.msk.f32.mxu0 %vm74_vm0, %v473_v26  ;;  %359 = vmatprep.mubr.msk.f32.mxu1 %vm78_vm1, %v473_v26 }
  0x3d   :  { %354 = vmatmul.mubr.msk.f32.vlgmr.msra.gmra.mxu0 %vm75_vm2, %v473_v26  ;;  %360 = vmatmul.mubr.msk.f32.vlgmr.msra.gmra.mxu1 %vm79_vm3, %v473_v26 }
  0x3e   :  { %356 = vmatprep.mubr.msk.f32.mxu0 %vm76_vm4, %v473_v26  ;;  %362 = vmatprep.mubr.msk.f32.mxu1 %vm80_vm5, %v473_v26 }
  0x41   :  { %357 = vmatmul.mubr.msk.f32.gmra.mxu0 %vm77_vm6, %v473_v26  ;;  %363 = vmatmul.mubr.msk.f32.gmra.mxu1 %vm81_vm7, %v473_v26 }
  0xfd   :  { %v355_v27 = vpop.f32.mrf.mxu0  ;;  %v361_v28 = vpop.f32.mrf.mxu1 }
  0xfe   :  { %255 = vst [vmem:[#allocation8 + $0x8] sm:$0xff] %v355_v27  ;;  %259 = vst [vmem:[#allocation8 + $0x28] sm:$0xff] %v361_v28 }
  0xff   :  { %v188_v29 = vpop.f32.mrf.mxu0  ;;  %v208_v30 = vpop.f32.mrf.mxu1 }
 0x100   :  { %254 = vst [vmem:[#allocation8] sm:$0xff] %v188_v29  ;;  %258 = vst [vmem:[#allocation8 + $0x20] sm:$0xff] %v208_v30 }
 0x101   :  { %v358_v31 = vpop.f32.mrf.mxu0  ;;  %v364_v32 = vpop.f32.mrf.mxu1 }
 0x102   :  { %257 = vst [vmem:[#allocation8 + $0x18] sm:$0xff] %v358_v31  ;;  %261 = vst [vmem:[#allocation8 + $0x38] sm:$0xff] %v364_v32 }
 0x103   :  { %v198_v33 = vpop.f32.mrf.mxu0  ;;  %v218_v34 = vpop.f32.mrf.mxu1 }
 0x104   :  { %256 = vst [vmem:[#allocation8 + $0x10] sm:$0xff] %v198_v33  ;;  %260 = vst [vmem:[#allocation8 + $0x30] sm:$0xff] %v218_v34 }
 0x105   :  { %454 = shalt.err (!%p451_p0)
}
 0x106   :  { %273 = dma.vmem_to_hbm [thread:$0]  %s268_s1, 1024, %s507_s2, [#allocation5], %s471_s18, %s471_s18, %s472_s19  }
 0x107   :  { %467 = dma.done.wait [#allocation5], 1024  }
 0x108   :  { %468 = vsyncadd [#allocation5], 4294966272 }
 0x109   :  { %277 = vsyncpa [#allocation4], 1 }
 0x10a   :  { %278 = vsyncpa [#allocation7], 1 }
 0x10b   :  { %279 = vsyncpa [#allocation5], 1 }

</bundles_post_ra>
